<compile_context>
chip_gen: v6e
topology: v6e:2x2x1
jax: 0.10.0
libtpu: 0.0.40
codegen_flags: <defaults>
</compile_context>

<pallas_src>
import jax
import jax.numpy as jnp
from jax.experimental import pallas as pl
from jax.experimental.pallas import tpu as pltpu

_LANE = 128


def _denormalize_kernel(scale_ref, m_ref, o_ref):
    # scale_ref: VMEM f32[5, 1]     (per-column scale, broadcast over lanes)
    # m_ref:     VMEM [5, TILE_N]   (input dtype, rows = moment components)
    # o_ref:     VMEM f32[5, TILE_N]
    o_ref[...] = m_ref[...].astype(jnp.float32) * scale_ref[...]


def _denormalize_moments_pallas(moments: jax.Array, w, h, *, tile_n: int = 512) -> jax.Array:
    """moments: [N, 5] (any numeric dtype) -> denormalized float32 [N, 5]."""
    n, c = moments.shape
    assert c == 5, f"expected [N, 5] moments, got {moments.shape}"

    w = float(w)
    h = float(h)
    # Explicit per-column scale (no fallthrough branch): cx, cy, mu20, mu11, mu02.
    scale = jnp.array([[w], [h], [w * w], [w * h], [h * h]], dtype=jnp.float32)  # (5, 1)

    # Lane-dense layout: put N on the 128-lane axis.
    m_t = moments.T  # (5, N)
    n_pad = max(_LANE, ((n + _LANE - 1) // _LANE) * _LANE)
    tile = min(tile_n, n_pad)                      # multiple of 128 by construction
    n_pad = ((n_pad + tile - 1) // tile) * tile    # divisible by tile
    if n_pad != n:
        m_t = jnp.pad(m_t, ((0, 0), (0, n_pad - n)))

    grid = (n_pad // tile,)

    out_t = pl.pallas_call(
        _denormalize_kernel,
        out_shape=jax.ShapeDtypeStruct((5, n_pad), jnp.float32),
        grid_spec=pltpu.PrefetchScalarGridSpec(
            num_scalar_prefetch=0,
            grid=grid,
            in_specs=[
                # tiny resident scale block (block == full array dims -> legal)
                pl.BlockSpec((5, 1), lambda i: (0, 0)),
                # lane-dense moment tile
                pl.BlockSpec((5, tile), lambda i: (0, i)),
            ],
            out_specs=pl.BlockSpec((5, tile), lambda i: (0, i)),
        ),
        compiler_params=pltpu.CompilerParams(
            dimension_semantics=("parallel",),
        ),
    )(scale, m_t)

    return out_t[:, :n].T  # back to [N, 5]


def denormalize_moments(moments: jax.Array, w, h, *, use_pallas: bool = True) -> jax.Array:
    if not use_pallas:
        # For tiny N (tens of detections) plain jnp fuses with neighbors and
        # avoids the pallas_call launch/DMA overhead entirely.
        scale = jnp.array(
            [float(w), float(h), float(w) ** 2, float(w) * float(h), float(h) ** 2],
            dtype=jnp.float32,
        )
        return moments.astype(jnp.float32) * scale
    return _denormalize_moments_pallas(moments, w, h)


class DenormalizeMoments:
    """JAX/Pallas re-implementation of the PyTorch DenormalizeMoments transform."""

    def __init__(self, use_pallas: bool = True):
        self.use_pallas = use_pallas

    def __call__(self, image, target):
        h, w = image.shape[-2], image.shape[-1]
        if "moments" in target:
            # jnp arrays are immutable -> a shallow dict copy reproduces
            # copy.deepcopy semantics (caller's target['moments'] untouched).
            target = dict(target)
            target["moments"] = denormalize_moments(
                target["moments"], w, h, use_pallas=self.use_pallas
            )
        return image, target


if __name__ == "__main__":
    key = jax.random.PRNGKey(0)
    k_img, k_mom = jax.random.split(key)

    C, H, W = 3, 16, 16
    N = 8
    image = jax.random.normal(k_img, (C, H, W), dtype=jnp.float32)
    # normalized moments in [0, 1): (cx, cy, mu20, mu11, mu02)
    moments = jax.random.uniform(k_mom, (N, 5), dtype=jnp.float32)
    target = {"moments": moments, "labels": jnp.arange(N, dtype=jnp.int32)}

    tfm = DenormalizeMoments(use_pallas=True)
    out_image, out_target = tfm(image, target)
    out_moments = jax.block_until_ready(out_target["moments"])

    # reference check (plain JAX): denormalize == multiply by scale
    scale = jnp.array([W, H, W * W, W * H, H * H], dtype=jnp.float32)
    ref = moments * scale
    assert out_moments.shape == (N, 5) and out_moments.dtype == jnp.float32
    assert jnp.allclose(out_moments, ref, rtol=1e-6, atol=1e-6)
    # image passes through unchanged, original moments untouched
    assert jnp.array_equal(out_image, image)
    assert jnp.array_equal(target["moments"], moments)

    print("KERNEL_OK")
</pallas_src>

<mosaic_0001>
module attributes {stable_mosaic.version = 11 : i64} {
  func.func @_denormalize_kernel(%arg0: i32, %arg1: memref<5x1xf32, #tpu.memory_space<vmem>>, %arg2: memref<5x128xf32, #tpu.memory_space<vmem>>, %arg3: memref<5x128xf32, #tpu.memory_space<vmem>>) attributes {dimension_semantics = [#tpu.dimension_semantics<parallel>], iteration_bounds = array<i64: 1>, scalar_prefetch = 0 : i64, scratch_operands = 0 : i64, tpu.core_type = #tpu.core_type<tc>, window_params = [{pipeline_mode = #tpu.pipeline_mode<synchronous>, transform_indices = @transform_0, window_bounds = array<i64: 5, 1>}, {transform_indices = @transform_1, window_bounds = array<i64: 5, 128>}, {transform_indices = @transform_2, window_bounds = array<i64: 5, 128>}]} {
    %c0 = arith.constant 0 : index
    %c0_0 = arith.constant 0 : index
    %0 = vector.load %arg2[%c0, %c0_0] : memref<5x128xf32, #tpu.memory_space<vmem>>, vector<5x128xf32>
    %c0_1 = arith.constant 0 : index
    %c0_2 = arith.constant 0 : index
    %1 = vector.load %arg1[%c0_1, %c0_2] : memref<5x1xf32, #tpu.memory_space<vmem>>, vector<5x1xf32>
    %2 = vector.broadcast %1 : vector<5x1xf32> to vector<5x128xf32>
    %3 = arith.mulf %0, %2 : vector<5x128xf32>
    %c0_3 = arith.constant 0 : index
    %c0_4 = arith.constant 0 : index
    %4 = vector.load %arg3[%c0_3, %c0_4] : memref<5x128xf32, #tpu.memory_space<vmem>>, vector<5x128xf32>
    tpu.vector_store %arg3[%c0_3, %c0_4], %3 {strides = array<i32>} : memref<5x128xf32, #tpu.memory_space<vmem>>, vector<5x128xf32>,
    return
  }
  func.func @transform_0(%arg0: i32) -> (i32, i32) {
    %c0_i32 = arith.constant 0 : i32
    %c0_i32_0 = arith.constant 0 : i32
    %c0_i32_1 = arith.constant 0 : i32
    return %c0_i32, %c0_i32_0 : i32, i32
  }
  func.func @transform_1(%arg0: i32) -> (i32, i32) {
    %c0_i32 = arith.constant 0 : i32
    %c0_i32_0 = arith.constant 0 : i32
    return %c0_i32, %arg0 : i32, i32
  }
  func.func @transform_2(%arg0: i32) -> (i32, i32) {
    %c0_i32 = arith.constant 0 : i32
    %c0_i32_0 = arith.constant 0 : i32
    return %c0_i32, %arg0 : i32, i32
  }
}

</mosaic_0001>

<bundles_post_ra>
// kernel: tpu_custom_call.1
= control target key start
LH: loop header
LB: loop body
LE: loop exit
PB: predicated region body
PF: predicated region fallthrough
CT: control target
= control target key end

     0   :  { %v60_v1 = vmov 0   ;;  %s86_s0 = inlined_call_operand.vmem [shape: f32[5,1], index: 0, kind: input, shape index: {}]   ;;  %s87_s1 = inlined_call_operand.vmem [shape: f32[5,128], index: 1, kind: input, shape index: {}]   ;;  %s88_s2 = inlined_call_operand.hbm [shape: f32[5,128], index: 2, kind: output, shape index: {}]  }
   0x1   :  { %v13_v0 = vld [vmem:[%s86_s0] sm:$0x1f]  ;;  %37 = vset.pattern.permute.xlu0 %v60_v1 }
   0x2   :  { %7 = vsyncpa [#allocation3], 0  ;;  %16 = vperm.xlu0 %37, %v13_v0   ;;  %v12_v2 = vld [vmem:[%s87_s1] sm:$0x1f]  ;;  %s61_s13 = smov [#allocation2]  }
   0x3   :  { %s27_s14 = sshll.u32 %s61_s13, 4  ;;  %s28_s14 = int_to_ptr.vmem [resolvable:$true] %s27_s14 }
   0x4   :  { %s38_s15 = scalar_lea.vmem %s28_s14, 128  ;;  %p43_p1 = scmp.lt.s32.totalorder %s28_s14, %s28_s14 }
   0x5   :  { %p39_p0 = scmp.ne.s32.totalorder %s28_s14, %s38_s15  ;;  %p44_p2 = scmp.lt.s32.totalorder %s38_s15, %s38_s15 }
   0x7   :  { %p45_p3 = por %p44_p2, %p43_p1 }
   0x9   :  { %p46_p4 = pnand %p45_p3, %p39_p0 }
  0x7d   :  { %v17_v3 = vpop.permute.xlu0 %16 }
  0x7e   :  { %v19_v4 = vmul.f32 %v17_v3, %v12_v2 }
  0x80   :  { %20 = vst [vmem:[#allocation2] sm:$0x1f] %v19_v4 }
  0x81   :  { %49 = shalt.err (!%p46_p4)
}
  0x82   :  { %30 = dma.vmem_to_hbm [thread:$0]  %s28_s14, 128, %s88_s2, [#allocation3]  }
  0x83   :  { %58 = dma.done.wait [#allocation3], 128  }
  0x84   :  { %59 = vsyncadd [#allocation3], 4294967168 }
  0x85   :  { %34 = vsyncpa [#allocation3], 1 }

</bundles_post_ra>
